<compile_context>
chip_gen: v7x
topology: tpu7x:2x2x1
jax: 0.10.0
libtpu: 0.0.40
codegen_flags: <defaults>
</compile_context>

<pallas_src>
import jax
import jax.numpy as jnp
from jax.experimental import pallas as pl
from jax.experimental.pallas import tpu as pltpu

EPS = 1e-5
LANES = 128
VMEM_LIMIT = 48 * 1024 * 1024      # <= v7x 64 MiB physical; generous on v5e/v6e (128 MiB)
BLOCK_BUDGET = 12 * 1024 * 1024    # target bytes for the per-step (double-buffered) blocks
MAX_TILE_ROWS = 8192


def _round_up(x, m):
    return (x + m - 1) // m * m


def _pick_tile_m(m_rows, bytes_per_row):
    """VMEM-budget-driven tile size over the flat M = N*H*W axis.

    Keeps the grid >= 2 and even so both TensorCores get work on v7x; tile rows are a
    multiple of 8 (sublane); the caller zero-pads M up to grid * tile.
    """
    cap = min(MAX_TILE_ROWS, max(8, BLOCK_BUDGET // max(bytes_per_row, 1)))
    cap = max(8, (cap // 8) * 8)
    g = max(2, pl.cdiv(m_rows, cap))
    if g % 2:
        g += 1
    tile = max(8, _round_up(pl.cdiv(m_rows, g), 8))
    return tile, pl.cdiv(m_rows, tile)


def _phase_packed_weights(weight, cs):
    """[Cout, Cin, 3, 3] -> [9*Cin, 4*cs] bf16.

    Lane section p = a*2 + b holds the effective 2x2 kernel of output phase (a, b)
    (a/b = row/col parity on the 2x-upsampled grid) scattered into the 3x3 im2col tap grid
    of the ORIGINAL input; unused taps are zero.  K index = (kh*3 + kw)*Cin + cin.
    """
    cout, cin = weight.shape[0], weight.shape[1]
    # r[a][u, kh] = 1 iff original kernel row kh contributes to row tap u of phase a.
    r = jnp.array([[[1., 0., 0.], [0., 1., 1.]],
                   [[1., 1., 0.], [0., 0., 1.]]], dtype=weight.dtype)
    # wp[a, b, u, v, cin, cout]: effective 2x2 phase kernels (16 taps total).
    wp = jnp.einsum('auh,bvw,oihw->abuvio', r, r, weight)
    sections = []
    for a in range(2):
        for b in range(2):
            w_ab = jnp.pad(wp[a, b], ((a, 1 - a), (b, 1 - b), (0, 0), (0, 0)))  # [3,3,Cin,Cout]
            w_ab = jnp.pad(w_ab, ((0, 0), (0, 0), (0, 0), (0, cs - cout)))       # [3,3,Cin,cs]
            sections.append(w_ab.reshape(9 * cin, cs))
    return jnp.concatenate(sections, axis=-1).astype(jnp.bfloat16)               # [9Cin, 4cs]


def _conv_stats_kernel(lhs_ref, w_ref, conv_ref, stats_ref):
    """One MXU matmul per tile (4 phases x Cout packed into lanes) + partial BN statistics."""
    acc = jnp.dot(lhs_ref[...], w_ref[...], preferred_element_type=jnp.float32)
    conv_ref[...] = acc.astype(conv_ref.dtype)               # bf16, lane-dense store
    stats_ref[0] = jnp.concatenate(                          # only the 2 live rows
        [jnp.sum(acc, axis=0, keepdims=True),
         jnp.sum(acc * acc, axis=0, keepdims=True)], axis=0)


def up_conv_forward(x, weight, bias, gamma, beta, *, eps=EPS):
    """x: [N, Cin, H, W] f32 (NCHW). weight: [Cout, Cin, 3, 3]. Returns [N, Cout, 2H, 2W] f32."""
    del bias  # exactly cancelled by train-mode BatchNorm's batch-mean subtraction
    N, Cin, H, W = x.shape
    Cout = weight.shape[0]
    H2, W2 = 2 * H, 2 * W
    M = N * H * W
    K = 9 * Cin                              # im2col taps of the ORIGINAL (not upsampled) input
    P = _round_up(4 * Cout, LANES)           # 4 output phases packed into the lane dim
    Cs = P // 4                              # per-phase lane section width

    # ---- staging (input-sized, once, in XLA): NHWC, pad by 1, 9-tap im2col, bf16 ----
    x_nhwc = jnp.transpose(x, (0, 2, 3, 1))
    x_pad = jnp.pad(x_nhwc, ((0, 0), (1, 1), (1, 1), (0, 0)))
    taps = [x_pad[:, kh:kh + H, kw:kw + W, :] for kh in range(3) for kw in range(3)]
    lhs = jnp.concatenate(taps, axis=-1).reshape(M, K).astype(jnp.bfloat16)       # [M, 9Cin]

    wmat = _phase_packed_weights(weight, Cs)                                      # [K, P]
    # NOTE: for very large Cin (9*Cin >> MXU depth) the 5/9 zero taps stop being free; a
    # 4-matmul K=4*Cin split of the same weights would then be preferable.

    # ---- tiling over flat M; zero-pad the tail (exact: stats divide by the true count) ----
    per_row = 4 * K + 8 * P      # 2x-buffered bf16 LHS + 2x-buffered bf16 out + f32 acc temp
    tile_m, G = _pick_tile_m(M, per_row)
    M_pad = G * tile_m
    if M_pad > M:
        lhs = jnp.pad(lhs, ((0, M_pad - M), (0, 0)))

    conv_out, stats = pl.pallas_call(
        _conv_stats_kernel,
        out_shape=(jax.ShapeDtypeStruct((M_pad, P), jnp.bfloat16),
                   jax.ShapeDtypeStruct((G, 2, P), jnp.float32)),
        grid=(G,),
        in_specs=[
            pl.BlockSpec((tile_m, K), lambda g: (g, 0)),
            # Grid-invariant weights; pl.Buffered(1) single-buffering would shave one more
            # copy for very large Cin*P, unnecessary at these sizes.
            pl.BlockSpec((K, P), lambda g: (0, 0)),
        ],
        out_specs=(
            pl.BlockSpec((tile_m, P), lambda g: (g, 0)),
            pl.BlockSpec((1, 2, P), lambda g: (g, 0, 0)),
        ),
        compiler_params=pltpu.CompilerParams(
            dimension_semantics=("parallel",),
            vmem_limit_bytes=VMEM_LIMIT),
    )(lhs, wmat)

    # ---- global BN statistics (tiny [Cout]-sized math in XLA) ----
    # E[x^2] - mean^2 in f32; adequate here, a per-tile-centred (Chan/Welford) combine would
    # be more robust for very large, high-mean activations.
    count = jnp.float32(N * H2 * W2)
    st = jnp.sum(stats, axis=0).reshape(2, 4, Cs)[:, :, :Cout]       # [2, 4, Cout]
    ch_sum, ch_sumsq = jnp.sum(st[0], axis=0), jnp.sum(st[1], axis=0)
    mean = ch_sum / count
    var = jnp.maximum(ch_sumsq / count - mean * mean, 0.0)           # biased, train-mode
    scale = gamma.astype(jnp.float32) * jax.lax.rsqrt(var + eps)
    shift = beta.astype(jnp.float32) - mean * scale

    # ---- epilogue: BN apply + ReLU + phase interleave + NCHW as ONE XLA fusion over the
    #      bf16 intermediate (replaces the former standalone Pallas BN/ReLU pass). ----
    conv = conv_out[:M].reshape(N, H, W, 4, Cs)[..., :Cout].astype(jnp.float32)
    y = jnp.maximum(conv * scale + shift, 0.0)                       # [N, H, W, 4, Cout]
    y = y.reshape(N, H, W, 2, 2, Cout)                               # [N, H, W, a, b, C]
    return jnp.transpose(y, (0, 5, 1, 3, 2, 4)).reshape(N, Cout, H2, W2)


def _reference(x, weight, bias, gamma, beta):
    # Pure-JAX reference (f32 everywhere, includes the conv bias).
    xu = jnp.repeat(jnp.repeat(x, 2, axis=2), 2, axis=3)
    conv = jax.lax.conv_general_dilated(
        xu, weight, window_strides=(1, 1), padding=((1, 1), (1, 1)),
        dimension_numbers=("NCHW", "OIHW", "NCHW"),
    ) + bias.reshape(1, -1, 1, 1)
    mean = jnp.mean(conv, axis=(0, 2, 3), keepdims=True)
    var = jnp.mean((conv - mean) ** 2, axis=(0, 2, 3), keepdims=True)
    xhat = (conv - mean) * jax.lax.rsqrt(var + EPS)
    y = xhat * gamma.reshape(1, -1, 1, 1) + beta.reshape(1, -1, 1, 1)
    return jnp.maximum(y, 0.0)


if __name__ == "__main__":
    key = jax.random.PRNGKey(0)
    k_x, k_w, k_b, k_g, k_be = jax.random.split(key, 5)

    N, Cin, Cout, H, W = 2, 4, 8, 16, 16   # output spatial = 32x32 after the x2 upsample

    x = jax.random.normal(k_x, (N, Cin, H, W), dtype=jnp.float32)
    weight = jax.random.normal(k_w, (Cout, Cin, 3, 3), dtype=jnp.float32) * 0.1
    bias = jax.random.normal(k_b, (Cout,), dtype=jnp.float32) * 0.1
    gamma = 1.0 + 0.1 * jax.random.normal(k_g, (Cout,), dtype=jnp.float32)
    beta = 0.1 * jax.random.normal(k_be, (Cout,), dtype=jnp.float32)

    up_conv = jax.jit(up_conv_forward)
    out = jax.block_until_ready(up_conv(x, weight, bias, gamma, beta))
    ref = jax.block_until_ready(_reference(x, weight, bias, gamma, beta))

    assert out.shape == (N, Cout, 2 * H, 2 * W)
    # bf16 matmul operands + bf16 conv intermediate (f32 accumulation / f32 BN stats).
    err = float(jnp.max(jnp.abs(out - ref)))
    assert jnp.allclose(out, ref, rtol=5e-2, atol=5e-2), err

    print("KERNEL_OK")
</pallas_src>

<mosaic_0001>
module attributes {stable_mosaic.version = 11 : i64} {
  func.func @_conv_stats_kernel(%arg0: i32, %arg1: memref<256x36xbf16, #tpu.memory_space<vmem>>, %arg2: memref<36x128xbf16, #tpu.memory_space<vmem>>, %arg3: memref<256x128xbf16, #tpu.memory_space<vmem>>, %arg4: memref<1x2x128xf32, #tpu.memory_space<vmem>>) attributes {dimension_semantics = [#tpu.dimension_semantics<parallel>], iteration_bounds = array<i64: 2>, scalar_prefetch = 0 : i64, scratch_operands = 0 : i64, tpu.core_type = #tpu.core_type<tc>, window_params = [{transform_indices = @transform_0, window_bounds = array<i64: 256, 36>}, {pipeline_mode = #tpu.pipeline_mode<synchronous>, transform_indices = @transform_1, window_bounds = array<i64: 36, 128>}, {transform_indices = @transform_2, window_bounds = array<i64: 256, 128>}, {transform_indices = @transform_3, window_bounds = array<i64: 1, 2, 128>}]} {
    %c0 = arith.constant 0 : index
    %c0_0 = arith.constant 0 : index
    %0 = vector.load %arg1[%c0, %c0_0] : memref<256x36xbf16, #tpu.memory_space<vmem>>, vector<256x36xbf16>
    %c0_1 = arith.constant 0 : index
    %c0_2 = arith.constant 0 : index
    %1 = vector.load %arg2[%c0_1, %c0_2] : memref<36x128xbf16, #tpu.memory_space<vmem>>, vector<36x128xbf16>
    %cst = arith.constant dense<0.000000e+00> : vector<256x128xf32>
    %2 = tpu.matmul %0, %1, %cst {dimension_numbers = #tpu.dot_dimension_numbers<[1], [0], [0], [1], [0, 0, 1, 1], [], []>} : vector<256x36xbf16>, vector<36x128xbf16>, vector<256x128xf32> -> vector<256x128xf32>
    %3 = arith.truncf %2 : vector<256x128xf32> to vector<256x128xbf16>
    %c0_3 = arith.constant 0 : index
    %c0_4 = arith.constant 0 : index
    %4 = vector.load %arg3[%c0_3, %c0_4] : memref<256x128xbf16, #tpu.memory_space<vmem>>, vector<256x128xbf16>
    tpu.vector_store %arg3[%c0_3, %c0_4], %3 {strides = array<i32>} : memref<256x128xbf16, #tpu.memory_space<vmem>>, vector<256x128xbf16>,
    %cst_5 = arith.constant dense<0.000000e+00> : vector<128xf32>
    %5 = vector.multi_reduction <add>, %2, %cst_5 [0] : vector<256x128xf32> to vector<128xf32>
    %6 = vector.shape_cast %5 : vector<128xf32> to vector<1x128xf32>
    %7 = arith.mulf %2, %2 : vector<256x128xf32>
    %cst_6 = arith.constant dense<0.000000e+00> : vector<128xf32>
    %8 = vector.multi_reduction <add>, %7, %cst_6 [0] : vector<256x128xf32> to vector<128xf32>
    %9 = vector.shape_cast %8 : vector<128xf32> to vector<1x128xf32>
    %10 = tpu.concatenate %6, %9 in 0 : vector<1x128xf32>, vector<1x128xf32> -> vector<2x128xf32>
    %c0_7 = arith.constant 0 : index
    %c0_8 = arith.constant 0 : index
    %c0_9 = arith.constant 0 : index
    %11 = vector.load %arg4[%c0_7, %c0_8, %c0_9] : memref<1x2x128xf32, #tpu.memory_space<vmem>>, vector<1x2x128xf32>
    %12 = vector.shape_cast %11 : vector<1x2x128xf32> to vector<2x128xf32>
    %13 = vector.shape_cast %10 : vector<2x128xf32> to vector<1x2x128xf32>
    tpu.vector_store %arg4[%c0_7, %c0_8, %c0_9], %13 {strides = array<i32>} : memref<1x2x128xf32, #tpu.memory_space<vmem>>, vector<1x2x128xf32>,
    return
  }
  func.func @transform_0(%arg0: i32) -> (i32, i32) {
    %c0_i32 = arith.constant 0 : i32
    %c0_i32_0 = arith.constant 0 : i32
    return %arg0, %c0_i32 : i32, i32
  }
  func.func @transform_1(%arg0: i32) -> (i32, i32) {
    %c0_i32 = arith.constant 0 : i32
    %c0_i32_0 = arith.constant 0 : i32
    %c0_i32_1 = arith.constant 0 : i32
    return %c0_i32, %c0_i32_0 : i32, i32
  }
  func.func @transform_2(%arg0: i32) -> (i32, i32) {
    %c0_i32 = arith.constant 0 : i32
    %c0_i32_0 = arith.constant 0 : i32
    return %arg0, %c0_i32 : i32, i32
  }
  func.func @transform_3(%arg0: i32) -> (i32, i32, i32) {
    %c0_i32 = arith.constant 0 : i32
    %c0_i32_0 = arith.constant 0 : i32
    %c0_i32_1 = arith.constant 0 : i32
    return %arg0, %c0_i32, %c0_i32_0 : i32, i32, i32
  }
}

</mosaic_0001>

<bundles_post_ra>
// kernel: up_conv_forward.1
= control target key start
LH: loop header
LB: loop body
LE: loop exit
PB: predicated region body
PF: predicated region fallthrough
CT: control target
= control target key end

     0   :  { %s1214_s12 = smov 0   ;;  %s1373_s0 = inlined_call_operand.vmem [shape: bf16[512,36], index: 0, kind: input, shape index: {}]   ;;  %s1374_s1 = inlined_call_operand.vmem [shape: bf16[36,128], index: 1, kind: input, shape index: {}]   ;;  %s1375_s2 = inlined_call_operand.vmem [shape: bf16[512,128], index: 2, kind: output, shape index: {0}]   ;;  %s1376_s3 = inlined_call_operand.vmem [shape: f32[2,2,128], index: 3, kind: output, shape index: {1}]  }
   0x1 LB: > { %s1220_s13 = sadd.s32 4294967295, %s1192_s12   ;;  %p892_p0 = scmp.ge.s32.totalorder %s1192_s12, 1  ;;  %s1192_s12 = sphi %s1214_s12, %s14_s12  }
   0x2   : > { %p141_p1 = scmp.lt.s32.totalorder %s1192_s12, 3 }
   0x4   : > { %p142_p2 = pnand %p892_p0, %p141_p1 }
   0x5   : > { %v1167_v0 = vld [vmem:[%s1374_s1] sm:$0xff] (!%p142_p2)   ;;  %v1168_v1 = vld [vmem:[%s1374_s1 + $0x8] sm:$0xff] (!%p142_p2)   ;;  %s893_s18 = sshll.u32 (!%p142_p2), %s1220_s13, 5  ;;  %v1169_v2 = vld [vmem:[%s1374_s1 + $0x10] ss:$0 sps:$4 sm:$0x33] (!%p142_p2)  }
   0x6   : > { %145 = sbr.rel (%p142_p2) target bundleno = 311 (0x137), region = 28  ;;  %1113 = vmatprep.subr.bf16.mxu0 (!%p142_p2), %v1167_v0  ;;  %p170_p3 = scmp.lt.s32.totalorder (!%p142_p2), %s893_s18, 63  ;;  %1151 = vmatprep.subr.bf16.mxu1 (!%p142_p2), %v1167_v0  ;;  %vm367_vm0 = vcmask (!%p142_p2), 1041408   ;;  %vm318_vm1 = vcmask (!%p142_p2), 293888   ;;  %vm798_vm2 = vcmask (!%p142_p2), 1040384  }
   0x7   : > { %1114 = vmatpush3.bf16.msra.mxu0 (!%p142_p2), %v1167_v0  ;;  %1154 = vmatpush3.bf16.msra.mxu1 (!%p142_p2), %v1167_v0  ;;  %v369_v3 = vsel (!%p142_p2), %vm367_vm0, %v1169_v2, 0  ;;  %p181_p4 = scmp.lt.s32.totalorder (!%p142_p2), %s1220_s13, 1 }
   0x8   : > { %1115 = vmatprep.subr.bf16.mxu0 (!%p142_p2), %v1168_v1  ;;  %1152 = vmatprep.subr.bf16.mxu1 (!%p142_p2), %v1168_v1 }
   0xb   : > { %1116 = vmatpush3.bf16.msra.mxu0 (!%p142_p2), %v1168_v1  ;;  %1155 = vmatpush3.bf16.msra.mxu1 (!%p142_p2), %v1168_v1 }
   0xc   : > { %1157 = vmatprep.subr.msk.bf16.mxu0 (!%p142_p2), %vm367_vm0, %v1169_v2  ;;  %1158 = vmatprep.subr.msk.bf16.mxu1 (!%p142_p2), %vm367_vm0, %v1169_v2 }
   0xd   : > { %s1378_s18 = smov (!%p170_p3, %s893_s18), 63  ;;  %s1380_s13 = smov (!%p181_p4, %s1220_s13), 1 }
   0xe   : > { %s894_s21 = sshll.u32 %s1378_s18, 2  ;;  %s897_s28 = sshll.u32 %s1380_s13, 1 }
   0xf   : > { %s1242_s24 = scalar_lea.vmem %s1373_s0, %s894_s21  ;;  %1118 = vmatpush3.bf16.msra.mxu0 %v369_v3  ;;  %1156 = vmatpush3.bf16.msra.mxu1 %v369_v3  ;;  %s1281_s27 = scalar_lea.vmem %s1375_s2, %s894_s21 }
  0x10   : > { %v1170_v4 = vld [vmem:[%s1242_s24] sm:$0xff]   ;;  %v1171_v5 = vld [vmem:[%s1242_s24 + $0x8] sm:$0xff]   ;;  %v1172_v6 = vld [vmem:[%s1242_s24 + $0x10] sm:$0xff]   ;;  %s184_s4 = scalar_lea.vmem %s1376_s3, %s897_s28 }
  0x11   : > { %1119 = vmatprep.mubr.msk.bf16.mxu0 %vm318_vm1, %v1170_v4  ;;  %v1173_v7 = vld [vmem:[%s1242_s24 + $0x18] sm:$0xff]   ;;  %v1178_v8 = vld [vmem:[%s1242_s24 + $0x40] sm:$0xff]   ;;  %v1179_v9 = vld [vmem:[%s1242_s24 + $0x48] sm:$0xff]  }
  0x12   : > { %1120 = vmatmul.mubr.msk.bf16.vlgmr.msra.gmra.mrb[0].mxu0 %vm318_vm1, %v1171_v5  ;;  %1135 = vmatprep.mubr.msk.bf16.mxu1 %vm318_vm1, %v1178_v8  ;;  %v1180_v10 = vld [vmem:[%s1242_s24 + $0x50] sm:$0xff]   ;;  %v1174_v11 = vld [vmem:[%s1242_s24 + $0x20] sm:$0xff]   ;;  %v1181_v12 = vld [vmem:[%s1242_s24 + $0x58] sm:$0xff]  }
  0x13   : > { %1123 = vmatprep.mubr.msk.bf16.mxu0 %vm318_vm1, %v1172_v6  ;;  %1136 = vmatmul.mubr.msk.bf16.vlgmr.msra.gmra.mrb[0].mxu1 %vm318_vm1, %v1179_v9  ;;  %v1182_v13 = vld [vmem:[%s1242_s24 + $0x60] sm:$0xff]   ;;  %v1175_v14 = vld [vmem:[%s1242_s24 + $0x28] sm:$0xff]   ;;  %v1176_v15 = vld [vmem:[%s1242_s24 + $0x30] sm:$0xff]  }
  0x14   : > { %1139 = vmatprep.mubr.msk.bf16.mxu1 %vm318_vm1, %v1180_v10  ;;  %v1183_v16 = vld [vmem:[%s1242_s24 + $0x68] sm:$0xff]   ;;  %v1184_v17 = vld [vmem:[%s1242_s24 + $0x70] sm:$0xff]   ;;  %v1177_v18 = vld [vmem:[%s1242_s24 + $0x38] sm:$0xff]  }
  0x15   : > { %v1185_v19 = vld [vmem:[%s1242_s24 + $0x78] sm:$0xff]  }
  0x1a   : > { %1124 = vmatmul.mubr.msk.bf16.gmra.mrb[4].mxu0 %vm318_vm1, %v1173_v7 }
  0x1b   : > { %1127 = vmatprep.mubr.msk.bf16.mxu0 %vm318_vm1, %v1174_v11  ;;  %1140 = vmatmul.mubr.msk.bf16.gmra.mrb[4].mxu1 %vm318_vm1, %v1181_v12 }
  0x1c   : > { %1143 = vmatprep.mubr.msk.bf16.mxu1 %vm318_vm1, %v1182_v13 }
  0x22   : > { %1128 = vmatmul.mubr.msk.bf16.gmra.mrb[8].mxu0 %vm318_vm1, %v1175_v14 }
  0x23   : > { %1131 = vmatprep.mubr.msk.bf16.mxu0 %vm318_vm1, %v1176_v15  ;;  %1144 = vmatmul.mubr.msk.bf16.gmra.mrb[8].mxu1 %vm318_vm1, %v1183_v16 }
  0x24   : > { %1147 = vmatprep.mubr.msk.bf16.mxu1 %vm318_vm1, %v1184_v17 }
  0x2a   : > { %1132 = vmatmul.mubr.msk.bf16.gmra.mrb[12].mxu0 %vm318_vm1, %v1177_v18 }
  0x2b   : > { %1148 = vmatmul.mubr.msk.bf16.gmra.mrb[12].mxu1 %vm318_vm1, %v1185_v19 }
  0xe5   : > { %v1121_v20 = vpop.f32.mrb[0].mxu0 }
  0xe6   : > { %v405_v21 = vpop.f32.mrb[1].mxu0  ;;  %v1284_v29 = vpop.f32.mrb[0].mxu1  ;;  %v731_v30 = vmul.f32 %v1121_v20, %v1121_v20 }
  0xe7   : > { %v1122_v22 = vpop.f32.mrb[2].mxu0  ;;  %v729_v25 = vmul.f32 %v405_v21, %v405_v21  ;;  %v1287_v33 = vpop.f32.mrb[1].mxu1 }
  0xe8   : > { %v1007_v23 = vpack.c.bf16 %v1122_v22, %v1121_v20  ;;  %v408_v24 = vpop.f32.mrb[3].mxu0  ;;  %v1289_v34 = vpop.f32.mrb[2].mxu1  ;;  %v732_v35 = vmul.f32 %v1122_v22, %v1122_v22 }
  0xe9   : > { %v1002_v26 = vpack.c.bf16 %v408_v24, %v405_v21  ;;  %v692_v27 = vadd.f32 %v408_v24, %v405_v21  ;;  %v730_v28 = vmul.f32 %v408_v24, %v408_v24  ;;  %v1047_v39 = vpack.c.bf16 %v1289_v34, %v1284_v29  ;;  %v1293_v40 = vpop.f32.mrb[3].mxu1 }
  0xea   : > { %1079 = vst [vmem:[%s1281_s27 + $0x8] sm:$0xff] %v1007_v23   ;;  %v1042_v42 = vpack.c.bf16 %v1293_v40, %v1287_v33 }
  0xeb   : > { %1003 = vst [vmem:[%s1281_s27] sm:$0xff] %v1002_v26   ;;  %v693_v31 = vadd.f32 %v1121_v20, %v692_v27  ;;  %v761_v32 = vadd.f32 %v730_v28, %v729_v25  ;;  %1087 = vst [vmem:[%s1281_s27 + $0x48] sm:$0xff] %v1047_v39  }
  0xec   : > { %1086 = vst [vmem:[%s1281_s27 + $0x40] sm:$0xff] %v1042_v42  }
  0xed   : > { %v762_v36 = vadd.f32 %v761_v32, %v731_v30  ;;  %v1125_v37 = vpop.f32.mrb[4].mxu0  ;;  %v694_v38 = vadd.f32 %v1122_v22, %v693_v31 }
  0xee   : > { %v421_v41 = vpop.f32.mrb[5].mxu0  ;;  %v1300_v53 = vpop.f32.mrb[4].mxu1  ;;  %v735_v54 = vmul.f32 %v1125_v37, %v1125_v37 }
  0xef   : > { %v695_v43 = vadd.f32 %v694_v38, %v421_v41  ;;  %v733_v44 = vmul.f32 %v421_v41, %v421_v41  ;;  %v763_v45 = vadd.f32 %v762_v36, %v732_v35  ;;  %v1126_v46 = vpop.f32.mrb[6].mxu0  ;;  %v1303_v57 = vpop.f32.mrb[5].mxu1 }
  0xf0   : > { %v1017_v47 = vpack.c.bf16 %v1126_v46, %v1125_v37  ;;  %v424_v48 = vpop.f32.mrb[7].mxu0  ;;  %v1305_v58 = vpop.f32.mrb[6].mxu1  ;;  %v736_v59 = vmul.f32 %v1126_v46, %v1126_v46 }
  0xf1   : > { %v764_v49 = vadd.f32 %v763_v45, %v733_v44  ;;  %v1012_v50 = vpack.c.bf16 %v424_v48, %v421_v41  ;;  %v696_v51 = vadd.f32 %v695_v43, %v424_v48  ;;  %v734_v52 = vmul.f32 %v424_v48, %v424_v48  ;;  %v1309_v0 = vpop.f32.mrb[7].mxu1 }
  0xf2   : > { %1081 = vst [vmem:[%s1281_s27 + $0x18] sm:$0xff] %v1017_v47   ;;  %v1057_v63 = vpack.c.bf16 %v1305_v58, %v1300_v53  ;;  %v1052_v2 = vpack.c.bf16 %v1309_v0, %v1303_v57 }
  0xf3   : > { %1080 = vst [vmem:[%s1281_s27 + $0x10] sm:$0xff] %v1012_v50   ;;  %v697_v55 = vadd.f32 %v1125_v37, %v696_v51  ;;  %v765_v56 = vadd.f32 %v764_v49, %v734_v52 }
  0xf4   : > { %1089 = vst [vmem:[%s1281_s27 + $0x58] sm:$0xff] %v1057_v63   ;;  %1088 = vst [vmem:[%s1281_s27 + $0x50] sm:$0xff] %v1052_v2   ;;  %v748_v2 = vmul.f32 %v1289_v34, %v1289_v34 }
  0xf5   : > { %v766_v60 = vadd.f32 %v765_v56, %v735_v54  ;;  %v1129_v61 = vpop.f32.mrb[8].mxu0  ;;  %v698_v62 = vadd.f32 %v1126_v46, %v697_v55  ;;  %v745_v46 = vmul.f32 %v1287_v33, %v1287_v33 }
  0xf6   : > { %v437_v1 = vpop.f32.mrb[9].mxu0  ;;  %v1316_v13 = vpop.f32.mrb[8].mxu1  ;;  %v739_v14 = vmul.f32 %v1129_v61, %v1129_v61 }
  0xf7   : > { %v699_v3 = vadd.f32 %v698_v62, %v437_v1  ;;  %v737_v4 = vmul.f32 %v437_v1, %v437_v1  ;;  %v767_v5 = vadd.f32 %v766_v60, %v736_v59  ;;  %v1130_v6 = vpop.f32.mrb[10].mxu0  ;;  %v1319_v17 = vpop.f32.mrb[9].mxu1  ;;  %v747_v62 = vmul.f32 %v1284_v29, %v1284_v29 }
  0xf8   : > { %v1027_v7 = vpack.c.bf16 %v1130_v6, %v1129_v61  ;;  %v440_v8 = vpop.f32.mrb[11].mxu0  ;;  %v1321_v18 = vpop.f32.mrb[10].mxu1  ;;  %v740_v19 = vmul.f32 %v1130_v6, %v1130_v6 }
  0xf9   : > { %v768_v9 = vadd.f32 %v767_v5, %v737_v4  ;;  %v1022_v10 = vpack.c.bf16 %v440_v8, %v437_v1  ;;  %v700_v11 = vadd.f32 %v699_v3, %v440_v8  ;;  %v738_v12 = vmul.f32 %v440_v8, %v440_v8  ;;  %v504_v24 = vpop.f32.mrb[11].mxu1 }
  0xfa   : > { %1083 = vst [vmem:[%s1281_s27 + $0x28] sm:$0xff] %v1027_v7   ;;  %v1067_v23 = vpack.c.bf16 %v1321_v18, %v1316_v13  ;;  %v1062_v26 = vpack.c.bf16 %v504_v24, %v1319_v17  ;;  %v749_v4 = vmul.f32 %v1303_v57, %v1303_v57  ;;  %v750_v8 = vmul.f32 %v1309_v0, %v1309_v0 }
  0xfb   : > { %1082 = vst [vmem:[%s1281_s27 + $0x20] sm:$0xff] %v1022_v10   ;;  %v701_v15 = vadd.f32 %v1129_v61, %v700_v11  ;;  %v769_v16 = vadd.f32 %v768_v9, %v738_v12  ;;  %v746_v61 = vmul.f32 %v1293_v40, %v1293_v40 }
  0xfc   : > { %1091 = vst [vmem:[%s1281_s27 + $0x68] sm:$0xff] %v1067_v23   ;;  %1090 = vst [vmem:[%s1281_s27 + $0x60] sm:$0xff] %v1062_v26  }
  0xfd   : > { %v770_v20 = vadd.f32 %v769_v16, %v739_v14  ;;  %v1133_v21 = vpop.f32.mrb[12].mxu0  ;;  %v702_v22 = vadd.f32 %v1130_v6, %v701_v15 }
  0xfe   : > { %v453_v25 = vpop.f32.mrb[13].mxu0  ;;  %v1149_v41 = vpop.f32.mrb[12].mxu1  ;;  %v743_v42 = vmul.f32 %v1133_v21, %v1133_v21 }
  0xff   : > { %v703_v27 = vadd.f32 %v702_v22, %v453_v25  ;;  %v741_v28 = vmul.f32 %v453_v25, %v453_v25  ;;  %v771_v30 = vadd.f32 %v770_v20, %v740_v19  ;;  %v1134_v31 = vpop.f32.mrb[14].mxu0  ;;  %v517_v45 = vpop.f32.mrb[13].mxu1  ;;  %v754_v19 = vmul.f32 %v504_v24, %v504_v24 }
 0x100   : > { %v1037_v32 = vpack.c.bf16 %v1134_v31, %v1133_v21  ;;  %v456_v35 = vpop.f32.mrb[15].mxu0  ;;  %v1150_v47 = vpop.f32.mrb[14].mxu1  ;;  %v744_v48 = vmul.f32 %v1134_v31, %v1134_v31  ;;  %v755_v20 = vmul.f32 %v1316_v13, %v1316_v13  ;;  %v756_v22 = vmul.f32 %v1321_v18, %v1321_v18 }
 0x101   : > { %v772_v36 = vadd.f32 %v771_v30, %v741_v28  ;;  %v1032_v37 = vpack.c.bf16 %v456_v35, %v453_v25  ;;  %v704_v38 = vadd.f32 %v703_v27, %v456_v35  ;;  %v742_v39 = vmul.f32 %v456_v35, %v456_v35  ;;  %v520_v52 = vpop.f32.mrb[15].mxu1 }
 0x102   : > { %1085 = vst [vmem:[%s1281_s27 + $0x38] sm:$0xff] %v1037_v32   ;;  %v1077_v51 = vpack.c.bf16 %v1150_v47, %v1149_v41  ;;  %v1072_v54 = vpack.c.bf16 %v520_v52, %v517_v45  ;;  %v757_v25 = vmul.f32 %v517_v45, %v517_v45  ;;  %v759_v30 = vmul.f32 %v1149_v41, %v1149_v41 }
 0x103   : > { %1084 = vst [vmem:[%s1281_s27 + $0x30] sm:$0xff] %v1032_v37   ;;  %v705_v43 = vadd.f32 %v1133_v21, %v704_v38  ;;  %v773_v44 = vadd.f32 %v772_v36, %v742_v39  ;;  %v760_v35 = vmul.f32 %v1150_v47, %v1150_v47 }
 0x104   : > { %1093 = vst [vmem:[%s1281_s27 + $0x78] sm:$0xff] %v1077_v51   ;;  %1092 = vst [vmem:[%s1281_s27 + $0x70] sm:$0xff] %v1072_v54  }
 0x105   : > { %v774_v49 = vadd.f32 %v773_v44, %v743_v42  ;;  %v706_v50 = vadd.f32 %v1134_v31, %v705_v43 }
 0x107   : > { %v707_v55 = vadd.f32 %v706_v50, %v1287_v33  ;;  %v775_v56 = vadd.f32 %v774_v49, %v744_v48 }
 0x109   : > { %v776_v59 = vadd.f32 %v775_v56, %v745_v46  ;;  %v708_v60 = vadd.f32 %v707_v55, %v1293_v40 }
 0x10b   : > { %v709_v63 = vadd.f32 %v1284_v29, %v708_v60  ;;  %v777_v1 = vadd.f32 %v776_v59, %v746_v61  ;;  %v751_v29 = vmul.f32 %v1300_v53, %v1300_v53 }
 0x10d   : > { %v778_v3 = vadd.f32 %v777_v1, %v747_v62  ;;  %v710_v33 = vadd.f32 %v1289_v34, %v709_v63  ;;  %v752_v34 = vmul.f32 %v1305_v58, %v1305_v58 }
 0x10f   : > { %v711_v5 = vadd.f32 %v710_v33, %v1303_v57  ;;  %v779_v6 = vadd.f32 %v778_v3, %v748_v2  ;;  %v753_v57 = vmul.f32 %v1319_v17, %v1319_v17 }
 0x111   : > { %v780_v7 = vadd.f32 %v779_v6, %v749_v4  ;;  %v712_v40 = vadd.f32 %v711_v5, %v1309_v0 }
 0x113   : > { %v713_v9 = vadd.f32 %v1300_v53, %v712_v40  ;;  %v781_v10 = vadd.f32 %v780_v7, %v750_v8 }
 0x115   : > { %v782_v11 = vadd.f32 %v781_v10, %v751_v29  ;;  %v714_v12 = vadd.f32 %v1305_v58, %v713_v9 }
 0x117   : > { %v715_v14 = vadd.f32 %v714_v12, %v1319_v17  ;;  %v783_v15 = vadd.f32 %v782_v11, %v752_v34 }
 0x119   : > { %v784_v16 = vadd.f32 %v783_v15, %v753_v57  ;;  %v716_v0 = vadd.f32 %v715_v14, %v504_v24  ;;  %v758_v24 = vmul.f32 %v520_v52, %v520_v52 }
 0x11b   : > { %v717_v53 = vadd.f32 %v1316_v13, %v716_v0  ;;  %v785_v21 = vadd.f32 %v784_v16, %v754_v19 }
 0x11d   : > { %v786_v23 = vadd.f32 %v785_v21, %v755_v20  ;;  %v718_v58 = vadd.f32 %v1321_v18, %v717_v53 }
 0x11f   : > { %v719_v26 = vadd.f32 %v718_v58, %v517_v45  ;;  %v787_v17 = vadd.f32 %v786_v23, %v756_v22 }
 0x121   : > { %v788_v27 = vadd.f32 %v787_v17, %v757_v25  ;;  %v720_v28 = vadd.f32 %v719_v26, %v520_v52 }
 0x123   : > { %v721_v31 = vadd.f32 %v1149_v41, %v720_v28  ;;  %v789_v32 = vadd.f32 %v788_v27, %v758_v24 }
 0x125   : > { %v722_v13 = vadd.f32 %v1150_v47, %v721_v31  ;;  %v790_v36 = vadd.f32 %v789_v32, %v759_v30 }
 0x127   : > { %v723_v37 = vrot.slane %v722_v13, 4  ;;  %v791_v38 = vadd.f32 %v790_v36, %v760_v35 }
 0x129   : > { %v724_v39 = vadd.f32 %v723_v37, %v722_v13  ;;  %v792_v42 = vrot.slane %v791_v38, 4 }
 0x12b   : > { %v725_v43 = vrot.slane %v724_v39, 2  ;;  %v793_v18 = vadd.f32 %v792_v42, %v791_v38 }
 0x12d   : > { %v726_v44 = vadd.f32 %v725_v43, %v724_v39  ;;  %v794_v45 = vrot.slane %v793_v18, 2 }
 0x12f   : > { %v727_v46 = vrot.slane %v726_v44, 1  ;;  %v795_v48 = vadd.f32 %v794_v45, %v793_v18 }
 0x131   : > { %v796_v49 = vrot.slane %v795_v48, 1  ;;  %v728_v41 = vadd.f32 %v727_v46, %v726_v44 }
 0x133   : > { %v797_v47 = vadd.f32 %v796_v49, %v795_v48 }
 0x135   : > { %v799_v50 = vsel %vm798_vm2, %v728_v41, %v797_v47 }
 0x136   : > { %800 = vst [vmem:[%s184_s4] sm:$0x3] %v799_v50 }
 0x137 PF: > { %s14_s12 = sadd.s32 1, %s1192_s12  }
 0x138   : > { %p11_p5 = scmp.ge.s32.totalorder %s14_s12, 4  }
 0x13a   :  { %13 = sbr.rel (!%p11_p5) target bundleno = 1 (0x1), region = 70 }

</bundles_post_ra>
